<compile_context>
chip_gen: v5e
topology: v5e:2x2
jax: 0.10.0
libtpu: 0.0.40
codegen_flags: <defaults>
</compile_context>

<pallas_src>
import functools

import jax
import jax.numpy as jnp
from jax.experimental import pallas as pl
from jax.experimental.pallas import tpu as pltpu

IGNORE_INDEX = 255


# ---------------------------------------------------------------------------
# static (host-side) helpers
# ---------------------------------------------------------------------------
def _cdiv(a, b):
    return -(-a // b)


def _round_up(x, m):
    return _cdiv(x, m) * m


def _vmem_capacity_bytes():
    try:
        return int(pltpu.get_tpu_info().vmem_capacity_bytes)
    except Exception:
        return 64 << 20     # conservative (v7x-sized) default


_VMEM_CAP_BYTES = _vmem_capacity_bytes()
# ~1/32 of physical VMEM per logits / L1-input block: 4 MiB on 128 MiB parts
# (v5e / v6e), 2 MiB on 64 MiB parts (v7x).  Kernel peak working set is
# roughly 6-8x one block (2x double-buffered inputs + elementwise temps), so
# it stays well inside the explicit scoped-VMEM limit below.
_DEFAULT_BLOCK_BYTES = int(min(4 << 20, max(1 << 20, _VMEM_CAP_BYTES // 32)))
_VMEM_LIMIT_BYTES = int(min((_VMEM_CAP_BYTES * 5) // 8, 96 << 20))


def _plan_row_tiling(rows, bytes_per_row, block_bytes):
    """Tile `rows` (each row = one lane-dense group of 128 elements).

    Returns (row_tile, n_tiles, n_chunks, tiles_per_chunk).  row_tile is a
    multiple of 8 unless it equals the full extent (allowed by the (8,128)
    rule).  A 2-way chunk axis is added whenever there are >= 2 tiles so both
    TensorCores of a dual-TC chip stay busy even at batch == 1; phantom tiles
    of the last chunk are clamped in the index_map and masked in-kernel.
    """
    tr_max = max(8, (block_bytes // max(bytes_per_row, 1)) // 8 * 8)
    if rows <= tr_max:
        tr, tiles = rows, 1
    else:
        tiles = _cdiv(rows, tr_max)
        tr = _round_up(_cdiv(rows, tiles), 8)        # rebalance, keep mult of 8
        tiles = _cdiv(rows, tr)
    n_chunks = 2 if tiles >= 2 else 1
    tpc = _cdiv(tiles, n_chunks)
    return tr, tiles, n_chunks, tpc


# ---------------------------------------------------------------------------
# Pallas kernels
# ---------------------------------------------------------------------------
def _make_ce4_kernel(s_total, ts, tiles_per_chunk, num_classes, compute_dtype):
    """Masked cross-entropy partial reduction on the (N, C, S, 128) layout.

    Blocks: logits (1, C, ts, 128); labels (1, 1, ts, 128).  The class axis is
    a *major* axis, so per-class max / sum-exp / pick are plane-wise (ts, 128)
    VALU/EUP ops on full vregs.  Partials accumulate into a VMEM scratch with
    vreg adds; the scalar reduce + store runs once per (batch, chunk) sweep.
    """
    def kernel(logits_ref, labels_ref, osum_ref, ocnt_ref, acc_sum, acc_cnt):
        cc = pl.program_id(1)
        tt = pl.program_id(2)

        @pl.when(tt == 0)
        def _init():
            acc_sum[...] = jnp.zeros_like(acc_sum)
            acc_cnt[...] = jnp.zeros_like(acc_cnt)

        x = logits_ref[...]                                   # (1, C, ts, 128)
        labels = labels_ref[...][:, 0].astype(jnp.int32)      # (1, ts, 128)

        # class-axis max as a chain of plane-wise maxima
        m = x[:, 0].astype(compute_dtype)
        for j in range(1, num_classes):
            m = jnp.maximum(m, x[:, j].astype(compute_dtype))

        # class-axis sum-exp and label pick (f32 accumulation)
        se = jnp.zeros(m.shape, jnp.float32)
        picked = jnp.zeros(m.shape, jnp.float32)
        for j in range(num_classes):
            xj = x[:, j].astype(compute_dtype)
            se = se + jnp.exp(xj - m).astype(jnp.float32)
            picked = picked + jnp.where(labels == j, xj.astype(jnp.float32), 0.0)
        lse = jnp.log(se) + m.astype(jnp.float32)             # (1, ts, 128)

        # mask pixel rows past the true extent (partial tail / phantom tile)
        row = jax.lax.broadcasted_iota(jnp.int32, (1, ts, 128), 1)
        s0 = (cc * tiles_per_chunk + tt) * ts
        valid = jnp.logical_and(labels != IGNORE_INDEX, (s0 + row) < s_total)

        nll = jnp.where(valid, lse - picked, 0.0)             # (1, ts, 128) f32
        cnt = valid.astype(jnp.float32)

        if ts % 8 == 0:
            acc_sum[...] += nll.reshape(ts // 8, 8, 128).sum(axis=0)
            acc_cnt[...] += cnt.reshape(ts // 8, 8, 128).sum(axis=0)
        else:
            acc_sum[...] += nll.reshape(ts, 128).sum(axis=0, keepdims=True)
            acc_cnt[...] += cnt.reshape(ts, 128).sum(axis=0, keepdims=True)

        @pl.when(tt == tiles_per_chunk - 1)
        def _finalize():
            osum_ref[...] = jnp.sum(acc_sum[...]).reshape(1, 1, 1, 1)
            ocnt_ref[...] = jnp.sum(acc_cnt[...]).reshape(1, 1, 1, 1)

    return kernel


def _make_ce3_kernel(hw_total, t_lanes):
    """Fallback for HW % 128 != 0: (N, C, HW) layout (classes on sublanes),
    lane tail masked in-kernel (no host-side padding)."""
    def kernel(logits_ref, labels_ref, osum_ref, ocnt_ref):
        tt = pl.program_id(1)

        @pl.when(tt == 0)
        def _init():
            osum_ref[...] = jnp.zeros_like(osum_ref)
            ocnt_ref[...] = jnp.zeros_like(ocnt_ref)

        x = logits_ref[...].astype(jnp.float32)               # (1, C, T)
        labels = labels_ref[...].astype(jnp.int32)            # (1, 1, T)

        m = jnp.max(x, axis=1, keepdims=True)
        lse = jnp.log(jnp.sum(jnp.exp(x - m), axis=1, keepdims=True)) + m
        cls = jax.lax.broadcasted_iota(jnp.int32, x.shape, 1)
        picked = jnp.sum(jnp.where(cls == labels, x, 0.0), axis=1, keepdims=True)

        lane = jax.lax.broadcasted_iota(jnp.int32, labels.shape, 2)
        valid = jnp.logical_and(labels != IGNORE_INDEX,
                                (tt * t_lanes + lane) < hw_total)
        nll = jnp.where(valid, lse - picked, 0.0)

        osum_ref[...] += jnp.sum(nll, axis=2, keepdims=True)
        ocnt_ref[...] += jnp.sum(valid.astype(jnp.float32), axis=2, keepdims=True)

    return kernel


def _make_l1_kernel(rows_total, tr, tiles_per_chunk):
    """Sum |p - t| and count of nonzero targets, masked tail, VMEM scratch
    accumulation with a single reduce/store per chunk sweep."""
    def kernel(p_ref, t_ref, osum_ref, onnz_ref, acc_sum, acc_nnz):
        cc = pl.program_id(0)
        tt = pl.program_id(1)

        @pl.when(tt == 0)
        def _init():
            acc_sum[...] = jnp.zeros_like(acc_sum)
            acc_nnz[...] = jnp.zeros_like(acc_nnz)

        p = p_ref[...].astype(jnp.float32)                    # (tr, 128)
        t = t_ref[...].astype(jnp.float32)

        row = jax.lax.broadcasted_iota(jnp.int32, (tr, 128), 0)
        in_range = ((cc * tiles_per_chunk + tt) * tr + row) < rows_total

        diff = jnp.where(in_range, jnp.abs(p - t), 0.0)
        nnz = jnp.where(jnp.logical_and(in_range, t != 0.0), 1.0, 0.0)

        if tr % 8 == 0:
            acc_sum[...] += diff.reshape(tr // 8, 8, 128).sum(axis=0)
            acc_nnz[...] += nnz.reshape(tr // 8, 8, 128).sum(axis=0)
        else:
            acc_sum[...] += diff.sum(axis=0, keepdims=True)
            acc_nnz[...] += nnz.sum(axis=0, keepdims=True)

        @pl.when(tt == tiles_per_chunk - 1)
        def _finalize():
            osum_ref[...] = jnp.sum(acc_sum[...]).reshape(1, 1, 1)
            onnz_ref[...] = jnp.sum(acc_nnz[...]).reshape(1, 1, 1)

    return kernel


# ---------------------------------------------------------------------------
# Wrappers
# ---------------------------------------------------------------------------
@functools.partial(jax.jit, static_argnames=("block_bytes",))
def cross_entropy2d_loss(pred_nchw, target_nhw, block_bytes=_DEFAULT_BLOCK_BYTES):
    """nn.CrossEntropyLoss(ignore_index=255): mean NLL over valid pixels."""
    n, c, h, w = pred_nchw.shape
    hw = h * w

    labels = target_nhw
    if (not jnp.issubdtype(labels.dtype, jnp.integer)) or labels.dtype.itemsize > 4:
        labels = labels.astype(jnp.int32)

    # bf16 element math (f32 accumulation) only when the model emits bf16.
    compute_dtype = jnp.bfloat16 if pred_nchw.dtype == jnp.bfloat16 else jnp.float32

    if hw % 128 == 0:
        s = hw // 128
        ts, tiles, n_chunks, tpc = _plan_row_tiling(s, c * 128 * 4, block_bytes)
        logits4 = pred_nchw.reshape(n, c, s, 128)      # layout-preserving reshape
        labels4 = labels.reshape(n, 1, s, 128)
        acc_rows = 8 if ts % 8 == 0 else 1
        kernel = _make_ce4_kernel(s, ts, tpc, c, compute_dtype)

        def in_map(b, cc, tt):
            # clamp phantom tiles of the last chunk; they are masked in-kernel
            return (b, 0, jnp.minimum(cc * tpc + tt, tiles - 1), 0)

        psum, pcnt = pl.pallas_call(
            kernel,
            out_shape=(jax.ShapeDtypeStruct((n, n_chunks, 1, 1), jnp.float32),
                       jax.ShapeDtypeStruct((n, n_chunks, 1, 1), jnp.float32)),
            grid=(n, n_chunks, tpc),
            in_specs=[pl.BlockSpec((1, c, ts, 128), in_map),
                      pl.BlockSpec((1, 1, ts, 128), in_map)],
            out_specs=(pl.BlockSpec((1, 1, 1, 1), lambda b, cc, tt: (b, cc, 0, 0)),
                       pl.BlockSpec((1, 1, 1, 1), lambda b, cc, tt: (b, cc, 0, 0))),
            scratch_shapes=[pltpu.VMEM((acc_rows, 128), jnp.float32),
                            pltpu.VMEM((acc_rows, 128), jnp.float32)],
            compiler_params=pltpu.CompilerParams(
                dimension_semantics=("parallel", "parallel", "arbitrary"),
                vmem_limit_bytes=_VMEM_LIMIT_BYTES),
        )(logits4, labels4)
    else:
        # Lane-tiled fallback, tail masked in-kernel (still no host padding).
        logits3 = pred_nchw.reshape(n, c, hw)
        labels3 = labels.reshape(n, 1, hw)
        if hw < 128:
            t_lanes, tiles = hw, 1
        else:
            t_max = max(128, (block_bytes // (c * 4)) // 128 * 128)
            t_lanes = min(t_max, (hw // 128) * 128)
            tiles = _cdiv(hw, t_lanes)
        kernel = _make_ce3_kernel(hw, t_lanes)

        psum, pcnt = pl.pallas_call(
            kernel,
            out_shape=(jax.ShapeDtypeStruct((n, 1, 1), jnp.float32),
                       jax.ShapeDtypeStruct((n, 1, 1), jnp.float32)),
            grid=(n, tiles),
            in_specs=[pl.BlockSpec((1, c, t_lanes), lambda b, tt: (b, 0, tt)),
                      pl.BlockSpec((1, 1, t_lanes), lambda b, tt: (b, 0, tt))],
            out_specs=(pl.BlockSpec((1, 1, 1), lambda b, tt: (b, 0, 0)),
                       pl.BlockSpec((1, 1, 1), lambda b, tt: (b, 0, 0))),
            compiler_params=pltpu.CompilerParams(
                dimension_semantics=("parallel", "arbitrary"),
                vmem_limit_bytes=_VMEM_LIMIT_BYTES),
        )(logits3, labels3)

    return jnp.sum(psum) / jnp.sum(pcnt)


@functools.partial(jax.jit, static_argnames=("block_bytes",))
def l1_sum_over_nonzeros_loss(pred, target, block_bytes=_DEFAULT_BLOCK_BYTES):
    """nn.L1Loss(reduction='sum') / count_nonzero(target)  (0 if none)."""
    p = pred.reshape(-1)
    t = target.reshape(-1)
    e = p.size

    if e % 128 != 0:
        # TODO(synk): element count not lane-aligned; XLA fuses this into one
        # pass — a dedicated Pallas path would need a <128-element remainder.
        s = jnp.sum(jnp.abs(p.astype(jnp.float32) - t.astype(jnp.float32)))
        nnz = jnp.sum((t != 0).astype(jnp.float32))
        return jnp.where(nnz > 0, s / nnz, jnp.zeros_like(s))

    rows = e // 128
    tr, tiles, n_chunks, tpc = _plan_row_tiling(rows, 128 * 4, block_bytes)
    p2 = p.reshape(rows, 128)
    t2 = t.reshape(rows, 128)
    acc_rows = 8 if tr % 8 == 0 else 1
    kernel = _make_l1_kernel(rows, tr, tpc)

    def in_map(cc, tt):
        return (jnp.minimum(cc * tpc + tt, tiles - 1), 0)

    psum, pnnz = pl.pallas_call(
        kernel,
        out_shape=(jax.ShapeDtypeStruct((n_chunks, 1, 1), jnp.float32),
                   jax.ShapeDtypeStruct((n_chunks, 1, 1), jnp.float32)),
        grid=(n_chunks, tpc),
        in_specs=[pl.BlockSpec((tr, 128), in_map),
                  pl.BlockSpec((tr, 128), in_map)],
        out_specs=(pl.BlockSpec((1, 1, 1), lambda cc, tt: (cc, 0, 0)),
                   pl.BlockSpec((1, 1, 1), lambda cc, tt: (cc, 0, 0))),
        scratch_shapes=[pltpu.VMEM((acc_rows, 128), jnp.float32),
                        pltpu.VMEM((acc_rows, 128), jnp.float32)],
        compiler_params=pltpu.CompilerParams(
            dimension_semantics=("parallel", "arbitrary"),
            vmem_limit_bytes=_VMEM_LIMIT_BYTES),
    )(p2, t2)

    s = jnp.sum(psum)
    nnz = jnp.sum(pnnz)
    return jnp.where(nnz > 0, s / nnz, jnp.zeros_like(s))


# ---------------------------------------------------------------------------
# MultiTaskLoss module (JAX)
# ---------------------------------------------------------------------------
class MultiTaskLoss:
    def __init__(self, cfg, weights=None, loss_type="fixed"):
        self.losses = {}
        self.cfg = cfg
        self.weights = weights
        self.tasks = list(self.cfg.keys())
        self.n = len(self.tasks)
        # nn.Parameter(torch.ones(n)) -> deterministic init
        self.sigma = jnp.ones((self.n,), dtype=jnp.float32)
        self.loss_type = loss_type

    def __call__(self, predictions, targets):
        for task in self.tasks:
            if self.cfg[task]["active"]:
                prediction = predictions[task]
                target = targets[task]
                weight = self.weights[task] if self.weights else None
                loss_fn = self.cfg[task]["loss"]
                self.losses[task] = self.compute_task_loss(
                    prediction, target, weight, loss_fn)
        total_loss = self.compute_total_loss()
        return self.losses, total_loss

    def compute_task_loss(self, prediction, target, weight, loss_fn):
        # (`weight` is accepted but unused, matching the PyTorch code.)
        if loss_fn == "cross_entropy2d":
            return cross_entropy2d_loss(prediction, target)
        elif loss_fn == "l1":
            if prediction.shape != target.shape:
                if prediction.ndim == 4 and prediction.shape[1] == 1:
                    # permute(0,2,3,1).squeeze() with C==1 is just a reshape.
                    prediction = prediction.reshape(prediction.shape[0],
                                                    prediction.shape[2],
                                                    prediction.shape[3])
                else:
                    prediction = jnp.squeeze(
                        jnp.transpose(prediction, (0, 2, 3, 1)))
            return l1_sum_over_nonzeros_loss(prediction, target)
        raise ValueError(f"unknown loss_fn {loss_fn}")

    def compute_total_loss(self):
        loss = jnp.float32(0.0)
        if self.loss_type == "fixed":
            for task in self.losses:
                loss = loss + self.losses[task] * self.cfg[task]["loss_weight"]
        elif self.loss_type == "uncertainty":
            for i, task in enumerate(self.losses):
                if self.cfg[task]["loss"] == "cross_entropy2d":
                    loss = loss + (jnp.exp(-self.sigma[i]) * self.losses[task]
                                   + 0.5 * self.sigma[i])
                elif self.cfg[task]["loss"] == "l1":
                    loss = loss + 0.5 * (jnp.exp(-self.sigma[i]) * self.losses[task]
                                         + self.sigma[i])
        return loss


# ---------------------------------------------------------------------------
# Pure-JAX references (silent correctness checks)
# ---------------------------------------------------------------------------
def _ref_ce(pred_nchw, target_nhw):
    n, c, h, w = pred_nchw.shape
    logits = jnp.transpose(pred_nchw, (0, 2, 3, 1)).reshape(-1, c)
    labels = target_nhw.astype(jnp.int32).reshape(-1)
    logp = jax.nn.log_softmax(logits, axis=-1)
    picked = jnp.take_along_axis(
        logp, jnp.clip(labels, 0, c - 1)[:, None], axis=-1)[:, 0]
    valid = (labels != IGNORE_INDEX).astype(jnp.float32)
    return jnp.sum(-picked * valid) / jnp.sum(valid)


def _ref_l1(pred, target):
    nnz = jnp.sum((target != 0).astype(jnp.float32))
    s = jnp.sum(jnp.abs(pred.astype(jnp.float32) - target.astype(jnp.float32)))
    return jnp.where(nnz > 0, s / nnz, 0.0)


# ---------------------------------------------------------------------------
if __name__ == "__main__":
    cfg = {
        "semantic": {"active": True, "loss": "cross_entropy2d", "loss_weight": 1.0},
        "depth":    {"active": True, "loss": "l1",              "loss_weight": 0.5},
    }
    weights = {"semantic": 1.0, "depth": 1.0}

    key = jax.random.PRNGKey(0)
    k1, k2, k3, k4, k5 = jax.random.split(key, 5)

    # --- main module test: N=2, C=4, H=W=16 ------------------------------
    N, C, H, W = 2, 4, 16, 16
    sem_pred = jax.random.normal(k1, (N, C, H, W), dtype=jnp.float32)
    sem_tgt = jax.random.randint(k2, (N, H, W), 0, C).astype(jnp.int32)
    ignore_mask = jax.random.bernoulli(k3, 0.1, (N, H, W))
    sem_tgt = jnp.where(ignore_mask, IGNORE_INDEX, sem_tgt)

    dep_pred = jax.random.normal(k4, (N, 1, H, W), dtype=jnp.float32)
    dep_tgt = jax.random.normal(k5, (N, H, W), dtype=jnp.float32)
    dep_tgt = jnp.where(jax.random.bernoulli(k3, 0.2, (N, H, W)), 0.0, dep_tgt)

    predictions = {"semantic": sem_pred, "depth": dep_pred}
    targets = {"semantic": sem_tgt, "depth": dep_tgt}

    module = MultiTaskLoss(cfg, weights=weights, loss_type="fixed")
    losses, total = module(predictions, targets)
    total = jax.block_until_ready(total)

    ref_sem = _ref_ce(sem_pred, sem_tgt)
    ref_dep = _ref_l1(dep_pred.reshape(N, H, W), dep_tgt)
    ref_total = (ref_sem * cfg["semantic"]["loss_weight"]
                 + ref_dep * cfg["depth"]["loss_weight"])
    assert jnp.allclose(losses["semantic"], ref_sem, rtol=1e-4, atol=1e-5)
    assert jnp.allclose(losses["depth"], ref_dep, rtol=1e-4, atol=1e-5)
    assert jnp.allclose(total, ref_total, rtol=1e-4, atol=1e-5)

    # also exercise the 'uncertainty' combination path
    module_u = MultiTaskLoss(cfg, weights=weights, loss_type="uncertainty")
    _, total_u = module_u(predictions, targets)
    jax.block_until_ready(total_u)

    # --- exercise the HW % 128 != 0 fallback (lane-masked 3-D CE kernel) --
    H2 = W2 = 12
    p2 = jax.random.normal(k1, (N, C, H2, W2), dtype=jnp.float32)
    t2 = jax.random.randint(k2, (N, H2, W2), 0, C).astype(jnp.int32)
    t2 = jnp.where(jax.random.bernoulli(k3, 0.15, (N, H2, W2)), IGNORE_INDEX, t2)
    got2 = jax.block_until_ready(cross_entropy2d_loss(p2, t2))
    assert jnp.allclose(got2, _ref_ce(p2, t2), rtol=1e-4, atol=1e-5)

    # --- exercise multi-tile + 2-chunk + masked-tail paths (forced blocks) -
    H3 = W3 = 48                     # HW = 2304 = 18*128 -> ts=8, 3 tiles, 2 chunks
    p3 = jax.random.normal(k4, (1, C, H3, W3), dtype=jnp.float32)
    t3 = jax.random.randint(k5, (1, H3, W3), 0, C).astype(jnp.int32)
    t3 = jnp.where(jax.random.bernoulli(k3, 0.1, (1, H3, W3)), IGNORE_INDEX, t3)
    got3 = jax.block_until_ready(
        cross_entropy2d_loss(p3, t3, block_bytes=C * 8 * 128 * 4))
    assert jnp.allclose(got3, _ref_ce(p3, t3), rtol=1e-4, atol=1e-5)

    d3p = jax.random.normal(k1, (1, H3, W3), dtype=jnp.float32)
    d3t = jnp.where(jax.random.bernoulli(k2, 0.3, (1, H3, W3)), 0.0,
                    jax.random.normal(k5, (1, H3, W3), dtype=jnp.float32))
    got4 = jax.block_until_ready(
        l1_sum_over_nonzeros_loss(d3p, d3t, block_bytes=8 * 128 * 4))
    assert jnp.allclose(got4, _ref_l1(d3p, d3t), rtol=1e-4, atol=1e-5)

    print("KERNEL_OK")
</pallas_src>

<mosaic_0001>
module attributes {stable_mosaic.version = 11 : i64} {
  func.func @kernel(%arg0: i32, %arg1: i32, %arg2: i32, %arg3: memref<1x4x2x128xf32, #tpu.memory_space<vmem>>, %arg4: memref<1x1x2x128xi32, #tpu.memory_space<vmem>>, %arg5: memref<1x1x1x1xf32, #tpu.memory_space<vmem>>, %arg6: memref<1x1x1x1xf32, #tpu.memory_space<vmem>>, %arg7: memref<1x128xf32, #tpu.memory_space<vmem>>, %arg8: memref<1x128xf32, #tpu.memory_space<vmem>>) attributes {dimension_semantics = [#tpu.dimension_semantics<parallel>, #tpu.dimension_semantics<parallel>, #tpu.dimension_semantics<arbitrary>], iteration_bounds = array<i64: 2, 1, 1>, scalar_prefetch = 0 : i64, scratch_operands = 2 : i64, tpu.core_type = #tpu.core_type<tc>, window_params = [{transform_indices = @transform_0, window_bounds = array<i64: 1, 4, 2, 128>}, {transform_indices = @transform_1, window_bounds = array<i64: 1, 1, 2, 128>}, {transform_indices = @transform_2, window_bounds = array<i64: 1, 1, 1, 1>}, {transform_indices = @transform_3, window_bounds = array<i64: 1, 1, 1, 1>}]} {
    %c0_i32 = arith.constant 0 : i32
    %0 = arith.cmpi eq, %arg2, %c0_i32 : i32
    %1 = arith.extui %0 : i1 to i32
    %c0_i32_0 = arith.constant 0 : i32
    %2 = arith.cmpi ne, %1, %c0_i32_0 : i32
    scf.if %2 {
      %cst_30 = arith.constant 0.000000e+00 : f32
      %92 = vector.broadcast %cst_30 : f32 to vector<1x128xf32>
      %c0_31 = arith.constant 0 : index
      %c0_32 = arith.constant 0 : index
      %93 = vector.load %arg7[%c0_31, %c0_32] : memref<1x128xf32, #tpu.memory_space<vmem>>, vector<1x128xf32>
      tpu.vector_store %arg7[%c0_31, %c0_32], %92 {strides = array<i32>} : memref<1x128xf32, #tpu.memory_space<vmem>>, vector<1x128xf32>,
      %cst_33 = arith.constant 0.000000e+00 : f32
      %94 = vector.broadcast %cst_33 : f32 to vector<1x128xf32>
      %c0_34 = arith.constant 0 : index
      %c0_35 = arith.constant 0 : index
      %95 = vector.load %arg8[%c0_34, %c0_35] : memref<1x128xf32, #tpu.memory_space<vmem>>, vector<1x128xf32>
      tpu.vector_store %arg8[%c0_34, %c0_35], %94 {strides = array<i32>} : memref<1x128xf32, #tpu.memory_space<vmem>>, vector<1x128xf32>,
    } else {
    }
    %c0 = arith.constant 0 : index
    %c0_1 = arith.constant 0 : index
    %c0_2 = arith.constant 0 : index
    %c0_3 = arith.constant 0 : index
    %3 = vector.load %arg3[%c0, %c0_1, %c0_2, %c0_3] : memref<1x4x2x128xf32, #tpu.memory_space<vmem>>, vector<1x4x2x128xf32>
    %c0_4 = arith.constant 0 : index
    %c0_5 = arith.constant 0 : index
    %c0_6 = arith.constant 0 : index
    %c0_7 = arith.constant 0 : index
    %4 = vector.load %arg4[%c0_4, %c0_5, %c0_6, %c0_7] : memref<1x1x2x128xi32, #tpu.memory_space<vmem>>, vector<1x1x2x128xi32>
    %5 = vector.shape_cast %4 : vector<1x1x2x128xi32> to vector<1x2x128xi32>
    %6 = vector.extract_strided_slice %3 {offsets = [0, 0, 0, 0], sizes = [1, 1, 2, 128], strides = [1, 1, 1, 1]} : vector<1x4x2x128xf32> to vector<1x1x2x128xf32>
    %7 = vector.shape_cast %6 : vector<1x1x2x128xf32> to vector<1x2x128xf32>
    %8 = vector.extract_strided_slice %3 {offsets = [0, 1, 0, 0], sizes = [1, 1, 2, 128], strides = [1, 1, 1, 1]} : vector<1x4x2x128xf32> to vector<1x1x2x128xf32>
    %9 = vector.shape_cast %8 : vector<1x1x2x128xf32> to vector<1x2x128xf32>
    %10 = arith.maximumf %7, %9 : vector<1x2x128xf32>
    %11 = vector.extract_strided_slice %3 {offsets = [0, 2, 0, 0], sizes = [1, 1, 2, 128], strides = [1, 1, 1, 1]} : vector<1x4x2x128xf32> to vector<1x1x2x128xf32>
    %12 = vector.shape_cast %11 : vector<1x1x2x128xf32> to vector<1x2x128xf32>
    %13 = arith.maximumf %10, %12 : vector<1x2x128xf32>
    %14 = vector.extract_strided_slice %3 {offsets = [0, 3, 0, 0], sizes = [1, 1, 2, 128], strides = [1, 1, 1, 1]} : vector<1x4x2x128xf32> to vector<1x1x2x128xf32>
    %15 = vector.shape_cast %14 : vector<1x1x2x128xf32> to vector<1x2x128xf32>
    %16 = arith.maximumf %13, %15 : vector<1x2x128xf32>
    %cst = arith.constant 0.000000e+00 : f32
    %17 = vector.broadcast %cst : f32 to vector<1x2x128xf32>
    %cst_8 = arith.constant 0.000000e+00 : f32
    %18 = vector.broadcast %cst_8 : f32 to vector<1x2x128xf32>
    %19 = vector.extract_strided_slice %3 {offsets = [0, 0, 0, 0], sizes = [1, 1, 2, 128], strides = [1, 1, 1, 1]} : vector<1x4x2x128xf32> to vector<1x1x2x128xf32>
    %20 = vector.shape_cast %19 : vector<1x1x2x128xf32> to vector<1x2x128xf32>
    %21 = arith.subf %20, %16 : vector<1x2x128xf32>
    %22 = math.exp %21 : vector<1x2x128xf32>
    %23 = arith.addf %17, %22 : vector<1x2x128xf32>
    %c0_i32_9 = arith.constant 0 : i32
    %24 = vector.broadcast %c0_i32_9 : i32 to vector<1x2x128xi32>
    %25 = arith.cmpi eq, %5, %24 : vector<1x2x128xi32>
    %cst_10 = arith.constant 0.000000e+00 : f32
    %26 = vector.broadcast %cst_10 : f32 to vector<1x2x128xf32>
    %27 = arith.select %25, %20, %26 : vector<1x2x128xi1>, vector<1x2x128xf32>
    %28 = arith.addf %18, %27 : vector<1x2x128xf32>
    %29 = vector.extract_strided_slice %3 {offsets = [0, 1, 0, 0], sizes = [1, 1, 2, 128], strides = [1, 1, 1, 1]} : vector<1x4x2x128xf32> to vector<1x1x2x128xf32>
    %30 = vector.shape_cast %29 : vector<1x1x2x128xf32> to vector<1x2x128xf32>
    %31 = arith.subf %30, %16 : vector<1x2x128xf32>
    %32 = math.exp %31 : vector<1x2x128xf32>
    %33 = arith.addf %23, %32 : vector<1x2x128xf32>
    %c1_i32 = arith.constant 1 : i32
    %34 = vector.broadcast %c1_i32 : i32 to vector<1x2x128xi32>
    %35 = arith.cmpi eq, %5, %34 : vector<1x2x128xi32>
    %cst_11 = arith.constant 0.000000e+00 : f32
    %36 = vector.broadcast %cst_11 : f32 to vector<1x2x128xf32>
    %37 = arith.select %35, %30, %36 : vector<1x2x128xi1>, vector<1x2x128xf32>
    %38 = arith.addf %28, %37 : vector<1x2x128xf32>
    %39 = vector.extract_strided_slice %3 {offsets = [0, 2, 0, 0], sizes = [1, 1, 2, 128], strides = [1, 1, 1, 1]} : vector<1x4x2x128xf32> to vector<1x1x2x128xf32>
    %40 = vector.shape_cast %39 : vector<1x1x2x128xf32> to vector<1x2x128xf32>
    %41 = arith.subf %40, %16 : vector<1x2x128xf32>
    %42 = math.exp %41 : vector<1x2x128xf32>
    %43 = arith.addf %33, %42 : vector<1x2x128xf32>
    %c2_i32 = arith.constant 2 : i32
    %44 = vector.broadcast %c2_i32 : i32 to vector<1x2x128xi32>
    %45 = arith.cmpi eq, %5, %44 : vector<1x2x128xi32>
    %cst_12 = arith.constant 0.000000e+00 : f32
    %46 = vector.broadcast %cst_12 : f32 to vector<1x2x128xf32>
    %47 = arith.select %45, %40, %46 : vector<1x2x128xi1>, vector<1x2x128xf32>
    %48 = arith.addf %38, %47 : vector<1x2x128xf32>
    %49 = vector.extract_strided_slice %3 {offsets = [0, 3, 0, 0], sizes = [1, 1, 2, 128], strides = [1, 1, 1, 1]} : vector<1x4x2x128xf32> to vector<1x1x2x128xf32>
    %50 = vector.shape_cast %49 : vector<1x1x2x128xf32> to vector<1x2x128xf32>
    %51 = arith.subf %50, %16 : vector<1x2x128xf32>
    %52 = math.exp %51 : vector<1x2x128xf32>
    %53 = arith.addf %43, %52 : vector<1x2x128xf32>
    %c3_i32 = arith.constant 3 : i32
    %54 = vector.broadcast %c3_i32 : i32 to vector<1x2x128xi32>
    %55 = arith.cmpi eq, %5, %54 : vector<1x2x128xi32>
    %cst_13 = arith.constant 0.000000e+00 : f32
    %56 = vector.broadcast %cst_13 : f32 to vector<1x2x128xf32>
    %57 = arith.select %55, %50, %56 : vector<1x2x128xi1>, vector<1x2x128xf32>
    %58 = arith.addf %48, %57 : vector<1x2x128xf32>
    %59 = math.log %53 : vector<1x2x128xf32>
    %60 = arith.addf %59, %16 : vector<1x2x128xf32>
    %61 = tpu.iota {dimensions = array<i32: 1>} : vector<1x2x128xi32>
    %c1_i32_14 = arith.constant 1 : i32
    %62 = arith.muli %arg1, %c1_i32_14 : i32
    %63 = arith.addi %62, %arg2 : i32
    %c2_i32_15 = arith.constant 2 : i32
    %64 = arith.muli %63, %c2_i32_15 : i32
    %c255_i32 = arith.constant 255 : i32
    %65 = vector.broadcast %c255_i32 : i32 to vector<1x2x128xi32>
    %66 = arith.cmpi ne, %5, %65 : vector<1x2x128xi32>
    %67 = vector.broadcast %64 : i32 to vector<1x2x128xi32>
    %68 = arith.addi %67, %61 : vector<1x2x128xi32>
    %c2_i32_16 = arith.constant 2 : i32
    %69 = vector.broadcast %c2_i32_16 : i32 to vector<1x2x128xi32>
    %70 = arith.cmpi slt, %68, %69 : vector<1x2x128xi32>
    %71 = arith.andi %66, %70 : vector<1x2x128xi1>
    %72 = arith.subf %60, %58 : vector<1x2x128xf32>
    %cst_17 = arith.constant 0.000000e+00 : f32
    %73 = vector.broadcast %cst_17 : f32 to vector<1x2x128xf32>
    %74 = arith.select %71, %72, %73 : vector<1x2x128xi1>, vector<1x2x128xf32>
    %75 = arith.extui %71 : vector<1x2x128xi1> to vector<1x2x128xi32>
    %76 = arith.sitofp %75 : vector<1x2x128xi32> to vector<1x2x128xf32>
    %c0_18 = arith.constant 0 : index
    %c0_19 = arith.constant 0 : index
    %77 = vector.load %arg7[%c0_18, %c0_19] : memref<1x128xf32, #tpu.memory_space<vmem>>, vector<1x128xf32>
    %78 = vector.shape_cast %74 : vector<1x2x128xf32> to vector<2x128xf32>
    %cst_20 = arith.constant dense<0.000000e+00> : vector<128xf32>
    %79 = vector.multi_reduction <add>, %78, %cst_20 [0] : vector<2x128xf32> to vector<128xf32>
    %80 = vector.shape_cast %79 : vector<128xf32> to vector<1x128xf32>
    %81 = arith.addf %77, %80 : vector<1x128xf32>
    %c0_21 = arith.constant 0 : index
    %c0_22 = arith.constant 0 : index
    %82 = vector.load %arg7[%c0_21, %c0_22] : memref<1x128xf32, #tpu.memory_space<vmem>>, vector<1x128xf32>
    tpu.vector_store %arg7[%c0_21, %c0_22], %81 {strides = array<i32>} : memref<1x128xf32, #tpu.memory_space<vmem>>, vector<1x128xf32>,
    %c0_23 = arith.constant 0 : index
    %c0_24 = arith.constant 0 : index
    %83 = vector.load %arg8[%c0_23, %c0_24] : memref<1x128xf32, #tpu.memory_space<vmem>>, vector<1x128xf32>
    %84 = vector.shape_cast %76 : vector<1x2x128xf32> to vector<2x128xf32>
    %cst_25 = arith.constant dense<0.000000e+00> : vector<128xf32>
    %85 = vector.multi_reduction <add>, %84, %cst_25 [0] : vector<2x128xf32> to vector<128xf32>
    %86 = vector.shape_cast %85 : vector<128xf32> to vector<1x128xf32>
    %87 = arith.addf %83, %86 : vector<1x128xf32>
    %c0_26 = arith.constant 0 : index
    %c0_27 = arith.constant 0 : index
    %88 = vector.load %arg8[%c0_26, %c0_27] : memref<1x128xf32, #tpu.memory_space<vmem>>, vector<1x128xf32>
    tpu.vector_store %arg8[%c0_26, %c0_27], %87 {strides = array<i32>} : memref<1x128xf32, #tpu.memory_space<vmem>>, vector<1x128xf32>,
    %c0_i32_28 = arith.constant 0 : i32
    %89 = arith.cmpi eq, %arg2, %c0_i32_28 : i32
    %90 = arith.extui %89 : i1 to i32
    %c0_i32_29 = arith.constant 0 : i32
    %91 = arith.cmpi ne, %90, %c0_i32_29 : i32
    scf.if %91 {
      %c0_30 = arith.constant 0 : index
      %c0_31 = arith.constant 0 : index
      %92 = vector.load %arg7[%c0_30, %c0_31] : memref<1x128xf32, #tpu.memory_space<vmem>>, vector<1x128xf32>
      %93 = vector.shape_cast %92 : vector<1x128xf32> to vector<1x1x128xf32>
      %cst_32 = arith.constant dense<0.000000e+00> : vector<1xf32>
      %94 = vector.multi_reduction <add>, %93, %cst_32 [1, 2] : vector<1x1x128xf32> to vector<1xf32>
      %95 = vector.shape_cast %94 : vector<1xf32> to vector<1x1x1xf32>
      %96 = vector.extract %95[0, 0, 0] : f32 from vector<1x1x1xf32>
      %97 = vector.broadcast %96 : f32 to vector<1x1x1x1xf32>
      %c0_33 = arith.constant 0 : index
      %c0_34 = arith.constant 0 : index
      %c0_35 = arith.constant 0 : index
      %c0_36 = arith.constant 0 : index
      %98 = vector.load %arg5[%c0_33, %c0_34, %c0_35, %c0_36] : memref<1x1x1x1xf32, #tpu.memory_space<vmem>>, vector<1x1x1x1xf32>
      tpu.vector_store %arg5[%c0_33, %c0_34, %c0_35, %c0_36], %97 {strides = array<i32>} : memref<1x1x1x1xf32, #tpu.memory_space<vmem>>, vector<1x1x1x1xf32>,
      %c0_37 = arith.constant 0 : index
      %c0_38 = arith.constant 0 : index
      %99 = vector.load %arg8[%c0_37, %c0_38] : memref<1x128xf32, #tpu.memory_space<vmem>>, vector<1x128xf32>
      %100 = vector.shape_cast %99 : vector<1x128xf32> to vector<1x1x128xf32>
      %cst_39 = arith.constant dense<0.000000e+00> : vector<1xf32>
      %101 = vector.multi_reduction <add>, %100, %cst_39 [1, 2] : vector<1x1x128xf32> to vector<1xf32>
      %102 = vector.shape_cast %101 : vector<1xf32> to vector<1x1x1xf32>
      %103 = vector.extract %102[0, 0, 0] : f32 from vector<1x1x1xf32>
      %104 = vector.broadcast %103 : f32 to vector<1x1x1x1xf32>
      %c0_40 = arith.constant 0 : index
      %c0_41 = arith.constant 0 : index
      %c0_42 = arith.constant 0 : index
      %c0_43 = arith.constant 0 : index
      %105 = vector.load %arg6[%c0_40, %c0_41, %c0_42, %c0_43] : memref<1x1x1x1xf32, #tpu.memory_space<vmem>>, vector<1x1x1x1xf32>
      tpu.vector_store %arg6[%c0_40, %c0_41, %c0_42, %c0_43], %104 {strides = array<i32>} : memref<1x1x1x1xf32, #tpu.memory_space<vmem>>, vector<1x1x1x1xf32>,
    } else {
    }
    return
  }
  func.func @transform_0(%arg0: i32, %arg1: i32, %arg2: i32) -> (i32, i32, i32, i32) {
    %c1_i32 = arith.constant 1 : i32
    %0 = arith.muli %arg1, %c1_i32 : i32
    %1 = arith.addi %0, %arg2 : i32
    %c0_i32 = arith.constant 0 : i32
    %2 = arith.minsi %1, %c0_i32 : i32
    %c0_i32_0 = arith.constant 0 : i32
    %c0_i32_1 = arith.constant 0 : i32
    %c0_i32_2 = arith.constant 0 : i32
    return %arg0, %c0_i32_0, %2, %c0_i32_1 : i32, i32, i32, i32
  }
  func.func @transform_1(%arg0: i32, %arg1: i32, %arg2: i32) -> (i32, i32, i32, i32) {
    %c1_i32 = arith.constant 1 : i32
    %0 = arith.muli %arg1, %c1_i32 : i32
    %1 = arith.addi %0, %arg2 : i32
    %c0_i32 = arith.constant 0 : i32
    %2 = arith.minsi %1, %c0_i32 : i32
    %c0_i32_0 = arith.constant 0 : i32
    %c0_i32_1 = arith.constant 0 : i32
    %c0_i32_2 = arith.constant 0 : i32
    return %arg0, %c0_i32_0, %2, %c0_i32_1 : i32, i32, i32, i32
  }
  func.func @transform_2(%arg0: i32, %arg1: i32, %arg2: i32) -> (i32, i32, i32, i32) {
    %c0_i32 = arith.constant 0 : i32
    %c0_i32_0 = arith.constant 0 : i32
    %c0_i32_1 = arith.constant 0 : i32
    return %arg0, %arg1, %c0_i32, %c0_i32_0 : i32, i32, i32, i32
  }
  func.func @transform_3(%arg0: i32, %arg1: i32, %arg2: i32) -> (i32, i32, i32, i32) {
    %c0_i32 = arith.constant 0 : i32
    %c0_i32_0 = arith.constant 0 : i32
    %c0_i32_1 = arith.constant 0 : i32
    return %arg0, %arg1, %c0_i32, %c0_i32_0 : i32, i32, i32, i32
  }
}

</mosaic_0001>

<bundles_post_ra>
// kernel: cross_entropy2d_loss.1
= control target key start
LH: loop header
LB: loop body
LE: loop exit
PB: predicated region body
PF: predicated region fallthrough
CT: control target
= control target key end

     0   :  { %s622_s12 = smov 0   ;;  %s624_s13 = smov 0   ;;  %s677_s0 = inlined_call_operand.vmem [shape: f32[2,4,2,128], index: 0, kind: input, shape index: {}]   ;;  %s678_s1 = inlined_call_operand.vmem [shape: s32[2,1,2,128], index: 1, kind: input, shape index: {}]   ;;  %s679_s2 = inlined_call_operand.vmem [shape: f32[2,1,1,1], index: 2, kind: output, shape index: {0}]   ;;  %s680_s3 = inlined_call_operand.vmem [shape: f32[2,1,1,1], index: 3, kind: output, shape index: {1}]  }
   0x1   :  { %s626_s14 = smov 0  }
   0x2 LB: > { %s33_s15 = sadd.s32 1, %s595_s13  ;;  %p530_p0 = scmp.ge.s32.totalorder %s599_s14, 1  ;;  %s599_s14 = sphi %s626_s14, %s14_s14   ;;  %s595_s13 = sphi %s624_s13, %s684_s13   ;;  %s591_s12 = sphi %s622_s12, %s683_s12  }
   0x3   : > { %p35_p1 = scmp.ge.s32.totalorder %s33_s15, 2  ;;  %p206_p2 = scmp.lt.s32.totalorder %s599_s14, 3 }
   0x5   : > { %s686_s15 = smov (%p35_p1, %s33_s15), 0  ;;  %p207_p3 = pnand %p530_p0, %p206_p2 }
   0x6   : > { %p256_p4 = scmp.lt.s32.totalorder (!%p207_p3), %s591_s12, 1 }
   0x7   : > { %210 = sbr.rel (%p207_p3) target bundleno = 266 (0x10a), region = 28 }
   0xc   : > { %v601_v0 = vmov 0.0   ;;  %s688_s12 = smov (!%p256_p4, %s591_s12), 1  ;;  %v337_v4 = vlaneseq  ;;  %vm351_vm3 = vcmask 1041408   ;;  %vm375_vm8 = vcmask 1040384  }
   0xd   : > { %296 = vst [vmem:[#allocation2] sm:$0x1] %v601_v0  ;;  %s537_s16 = sshll.u32 %s688_s12, 3  ;;  %s533_s20 = sshll.u32 %s688_s12, 1  ;;  %vm387_vm9 = vcmask 0  }
   0xe   : > { %297 = vst [vmem:[#allocation3] sm:$0x1] %v601_v0  ;;  %s263_s19 = scalar_lea.vmem %s677_s0, %s537_s16  ;;  %s276_s23 = scalar_lea.vmem %s678_s1, %s533_s20  ;;  %v338_v8 = vshrl.u32 %v337_v4, 7 }
   0xf   : > { %v298_v1 = vld [vmem:[%s263_s19] sm:$0x3]  ;;  %v299_v2 = vld [vmem:[%s263_s19 + $0x2] sm:$0x3]  ;;  %v300_v3 = vld [vmem:[%s263_s19 + $0x4] sm:$0x3]  ;;  %s285_s26 = scalar_lea.vmem %s679_s2, %s688_s12  ;;  %s291_s30 = scalar_lea.vmem %s680_s3, %s688_s12 }
  0x10   : > { %v303_v5 = vmax.f32 %v298_v1, %v299_v2  ;;  %v301_v6 = vld [vmem:[%s263_s19 + $0x6] sm:$0x3]  ;;  %v302_v10 = vld [vmem:[%s276_s23] sm:$0x3]  ;;  %vm344_vm1 = vcmp.lt.s32.totalorder %v338_v8, 2 }
  0x11   : > { %vm341_vm0 = vcmp.ne.s32.totalorder %v302_v10, 255  ;;  %vm310_vm4 = vcmp.eq.s32.totalorder %v302_v10, 0  ;;  %vm317_vm5 = vcmp.eq.s32.totalorder %v302_v10, 1  ;;  %vm324_vm6 = vcmp.eq.s32.totalorder %v302_v10, 2 }
  0x12   : > { %v304_v7 = vmax.f32 %v303_v5, %v300_v3  ;;  %vm650_vm2 = vmand %vm341_vm0, %vm344_vm1  ;;  %v311_v30 = vsel %vm310_vm4, %v298_v1, 0.0  ;;  %v318_v31 = vsel %vm317_vm5, %v299_v2, 0.0  ;;  %v325_v37 = vsel %vm324_vm6, %v300_v3, 0.0 }
  0x13   : > { %v534_v20 = vsel %vm650_vm2, 1.0, %v601_v0  ;;  %v319_v35 = vadd.f32 %v318_v31, %v311_v30  ;;  %vm331_vm7 = vcmp.eq.s32.totalorder %v302_v10, 3 }
  0x14   : > { %v305_v9 = vmax.f32 %v304_v7, %v301_v6  ;;  %v362_v21 = vsel %vm351_vm3, %v534_v20, 0.0  ;;  %v332_v42 = vsel %vm331_vm7, %v301_v6, 0.0  ;;  %v350_v55 = vld [vmem:[#allocation2] sm:$0x1] }
  0x15   : > { %v363_v22 = vrot.slane %v362_v21, 4  ;;  %v361_v39 = vld [vmem:[#allocation3] sm:$0x1]  ;;  %v326_v40 = vadd.f32 %v325_v37, %v319_v35 }
  0x16   : > { %v306_v11 = vsub.f32 %v298_v1, %v305_v9  ;;  %v313_v12 = vsub.f32 %v299_v2, %v305_v9  ;;  %v320_v13 = vsub.f32 %v300_v3, %v305_v9  ;;  %v327_v14 = vsub.f32 %v301_v6, %v305_v9 }
  0x17   : > { %v364_v25 = vadd.f32 %v363_v22, %v362_v21  ;;  %v333_v44 = vadd.f32 %v332_v42, %v326_v40 }
  0x18   : > { %v307_v15 = vmul.f32 1.442695, %v306_v11  ;;  %v314_v16 = vmul.f32 1.442695, %v313_v12  ;;  %v321_v17 = vmul.f32 1.442695, %v320_v13 }
  0x19   : > { %v328_v18 = vmul.f32 1.442695, %v327_v14  ;;  %v365_v29 = vrot.slane %v364_v25, 2 }
  0x1a   : > { %567 = vpow2.f32 %v307_v15 }
  0x1b   : > { %569 = vpow2.f32 %v314_v16  ;;  %v366_v33 = vadd.f32 %v365_v29, %v364_v25 }
  0x1c   : > { %571 = vpow2.f32 %v321_v17 }
  0x1d   : > { %573 = vpow2.f32 %v328_v18  ;;  %v367_v36 = vrot.slane %v366_v33, 1 }
  0x1f   : > { %v368_v38 = vadd.f32 %v367_v36, %v366_v33 }
  0x20   : > { %v568_v23 = vpop.eup %567 }
  0x21   : > { %v570_v24 = vpop.eup %569  ;;  %v369_v41 = vadd.f32 %v368_v38, %v361_v39 }
  0x22   : > { %v572_v26 = vpop.eup %571  ;;  %v316_v27 = vadd.f32 %v570_v24, %v568_v23 }
  0x23   : > { %v574_v28 = vpop.eup %573  ;;  %370 = vst [vmem:[#allocation3] sm:$0x1] %v369_v41 }
  0x24   : > { %v323_v32 = vadd.f32 %v572_v26, %v316_v27 }
  0x26   : > { %v330_v34 = vadd.f32 %v574_v28, %v323_v32 }
  0x28   : > { %575 = vlog2.f32 %v330_v34 }
  0x2a   : > { %v389_v60 = vld [vmem:[#allocation3] sm:$0x1] }
  0x2b   : > { %v390_v61 = vsel %vm375_vm8, %v389_v60, 0.0 }
  0x2e   : > { %v576_v43 = vpop.eup %575 }
  0x2f   : > { %v335_v45 = vmul.f32 0.6931472, %v576_v43 }
  0x31   : > { %v336_v46 = vadd.f32 %v335_v45, %v305_v9 }
  0x33   : > { %v346_v47 = vsub.f32 %v336_v46, %v333_v44 }
  0x35   : > { %v347_v48 = vsel %vm650_vm2, %v346_v47, 0.0 }
  0x36   : > { %v352_v49 = vsel %vm351_vm3, %v347_v48, 0.0 }
  0x37   : > { %v353_v50 = vrot.slane %v352_v49, 4 }
  0x39   : > { %v354_v51 = vadd.f32 %v353_v50, %v352_v49 }
  0x3b   : > { %v355_v52 = vrot.slane %v354_v51, 2 }
  0x3d   : > { %v356_v53 = vadd.f32 %v355_v52, %v354_v51 }
  0x3f   : > { %v357_v54 = vrot.slane %v356_v53, 1 }
  0x41   : > { %v358_v56 = vadd.f32 %v357_v54, %v356_v53 }
  0x43   : > { %v359_v57 = vadd.f32 %v358_v56, %v350_v55 }
  0x45   : > { %360 = vst [vmem:[#allocation2] sm:$0x1] %v359_v57 }
  0x4c   : > { %v374_v58 = vld [vmem:[#allocation2] sm:$0x1] }
  0x4d   : > { %v376_v59 = vsel %vm375_vm8, %v374_v58, 0.0 }
  0x4e   : > { %377 = vadd.xlane.f32.xlu0 %v376_v59 }
  0x56   : > { %391 = vadd.xlane.f32.xlu0 %v390_v61 }
  0xc1   : > { %v378_v62 = vpop.xlane.xlu0 %377 }
  0xc2   : > { %v379_v63 = vrot.slane %v378_v62, 4 }
  0xc4   : > { %v380_v0 = vadd.f32 %v379_v63, %v378_v62 }
  0xc6   : > { %v381_v1 = vrot.slane %v380_v0, 2 }
  0xc8   : > { %v382_v2 = vadd.f32 %v381_v1, %v380_v0 }
  0xc9   : > { %v392_v3 = vpop.xlane.xlu0 %391 }
  0xca   : > { %v393_v4 = vrot.slane %v392_v3, 4  ;;  %v383_v5 = vrot.slane %v382_v2, 1 }
  0xcc   : > { %v394_v6 = vadd.f32 %v393_v4, %v392_v3  ;;  %v384_v7 = vadd.f32 %v383_v5, %v382_v2 }
  0xce   : > { %v395_v8 = vrot.slane %v394_v6, 2  ;;  %538 = vpush %v384_v7 }
  0xd0   : > { %v396_v9 = vadd.f32 %v395_v8, %v394_v6 }
  0xd2   : > { %v397_v10 = vrot.slane %v396_v9, 1 }
  0xd4   : > { %v398_v11 = vadd.f32 %v397_v10, %v396_v9 }
  0xd6   : > { %540 = vpush %v398_v11 }
  0xff   : > { %s539_s27 = spop %538 }
 0x100   : > { %v386_v12 = vstv %s539_s27 }
 0x101   : > { %388 = vst.msk [vmem:[%s285_s26] sm:$0x1] %vm387_vm9, %v386_v12 }
 0x107   : > { %s541_s4 = spop %540 }
 0x108   : > { %v400_v13 = vstv %s541_s4 }
 0x109   : > { %401 = vst.msk [vmem:[%s291_s30] sm:$0x1] %vm387_vm9, %v400_v13 }
 0x10a PF: > { %s14_s14 = sadd.s32 1, %s599_s14   ;;  %s683_s12 = smov %s595_s13 }
 0x10b   : > { %p11_p5 = scmp.ge.s32.totalorder %s14_s14, 4   ;;  %s684_s13 = smov %s686_s15 }
 0x10d   :  { %13 = sbr.rel (!%p11_p5) target bundleno = 2 (0x2), region = 81 }

</bundles_post_ra>
